<compile_context>
chip_gen: v6e
topology: v6e:2x2x1
jax: 0.10.0
libtpu: 0.0.40
codegen_flags: <defaults>
</compile_context>

<pallas_src>
import jax
import jax.numpy as jnp
from jax.experimental import pallas as pl
from jax.experimental.pallas import tpu as pltpu

NUM_CLASSES = 3          # fc2 real output width
PAD_CLASSES = 128        # lane-dense padded output width
NEG_PAD = -1e30          # finite large-negative pad bias (never -inf)


def siamese_kernel(x1_ref, x2_ref,
                   we0_ref, be0_ref, we1_ref, be1_ref,
                   alpha_ref,
                   wf1a_ref, wf1b_ref, bf1_ref,
                   wf2_ref, bf2_ref,
                   out_ref):
    """One batch tile of the full forward pass (both towers + classifier head)."""
    alpha = alpha_ref[0, 0]   # nn.PReLU() default: a single shared slope

    def tower(x_ref):
        # f32 rows arrive straight from HBM; the bf16 cast happens here on the
        # VPU and hides under the input DMA (no standalone XLA cast pass).
        x = x_ref[...].astype(jnp.bfloat16)
        h = jnp.dot(x, we0_ref[...], preferred_element_type=jnp.float32) + be0_ref[...]
        h = jnp.maximum(h, 0.0)                  # ReLU (f32 tail: safe on all gens)
        e = jnp.dot(h.astype(jnp.bfloat16), we1_ref[...],
                    preferred_element_type=jnp.float32) + be1_ref[...]
        # PReLU on the (implicit) concatenation [e1, e2]: elementwise, so it
        # commutes with the concat and can be applied per-tower.
        p = jnp.where(e > 0.0, e, alpha * e)
        return p.astype(jnp.bfloat16)

    # Two dots per layer against the same VMEM-resident weights — no in-kernel
    # concatenate / slice copies (they are NOT views on TPU).
    p1 = tower(x1_ref)
    p2 = tower(x2_ref)

    # fc1: cat([p1, p2], -1) @ W + b == p1 @ W[:E] + p2 @ W[E:] + b
    h1 = (jnp.dot(p1, wf1a_ref[...], preferred_element_type=jnp.float32)
          + jnp.dot(p2, wf1b_ref[...], preferred_element_type=jnp.float32)
          + bf1_ref[...])

    # fc2, lane-padded 3 -> 128 output columns (padded bias = -1e30) so the
    # store is an unmasked lane-dense vst.
    logits = jnp.dot(h1.astype(jnp.bfloat16), wf2_ref[...],
                     preferred_element_type=jnp.float32) + bf2_ref[...]

    # log_softmax over the 128 padded lanes (padded entries exp() to 0).
    m = jnp.max(logits, axis=-1, keepdims=True)
    s = logits - m
    lse = jnp.log(jnp.sum(jnp.exp(s), axis=-1, keepdims=True))
    out_ref[...] = (s - lse).astype(out_ref.dtype)


def _round_up(x, m):
    return -(-x // m) * m


def _pick_tile_b(B, in_dim, weight_bytes, *, vmem_budget=24 * 1024 * 1024):
    """in_dim-/dtype-aware batch tile: multiple of 16, largest that fits VMEM.

    Budget: 2 f32 input tiles x 2 pipeline buffers + 2 f32 output buffers per
    row, plus the resident weights, must stay under a conservative scoped-VMEM
    budget (well inside v7x's 64 MiB physical VMEM).
    """
    per_row = 2 * 2 * in_dim * 4 + 2 * PAD_CLASSES * 4
    avail = max(vmem_budget - weight_bytes, 16 * per_row)
    max_rows = max(16, avail // per_row)
    tile = 16
    for t in (1024, 512, 256, 128, 64, 32, 16):
        if t <= max_rows:
            tile = t
            break
    # v7x has 2 TensorCores: keep >= 2 "parallel" grid steps when the batch is
    # big enough that halving the tile still leaves >= 256-row tiles (smaller
    # tiles fall well off the HBM roofline on v5e/v6e, which have a single TC).
    if B >= 512:
        tile = min(tile, _round_up(-(-B // 2), 16))
    # Never exceed the (16-padded) batch.
    tile = min(tile, _round_up(B, 16))
    return tile


def siamese_forward(x1, x2, params, *, tile_b=None, single_buffer_weights=None):
    """x1, x2: (B, C, H, W) float -> log-softmax scores (B, 3) float32."""
    B = x1.shape[0]
    in_dim = int(x1.shape[1] * x1.shape[2] * x1.shape[3])

    # Keep the inputs f32: reading f32 once (4 B/elem) beats a standalone bf16
    # cast pass (4 B read + 2 B write + 2 B kernel read).  Cast is in-kernel.
    x1f = x1.reshape(B, in_dim).astype(jnp.float32)
    x2f = x2.reshape(B, in_dim).astype(jnp.float32)

    weight_names = ("we0", "be0", "we1", "be1", "wf1a", "wf1b", "bf1", "wf2p", "bf2p")
    weight_bytes = int(sum(params[k].size * params[k].dtype.itemsize
                           for k in weight_names))

    # TODO(synk): for very large in_dim (e.g. flattened 3x224x224) we0 alone can
    # exceed v7x's 64 MiB VMEM; that case needs a second "arbitrary" grid axis
    # K-tiling layer 0 with an f32 accumulator scratch.  Not needed here.

    if tile_b is None:
        tile_b = _pick_tile_b(B, in_dim, weight_bytes)
    tile_b = max(8, int(tile_b))

    num_tiles = -(-B // tile_b)
    Bp = num_tiles * tile_b
    if Bp != B:                       # pad the batch; padded rows are sliced off
        x1f = jnp.pad(x1f, ((0, Bp - B), (0, 0)))
        x2f = jnp.pad(x2f, ((0, Bp - B), (0, 0)))

    # Invariant weight blocks: whole-array, same block every grid step -> stay
    # VMEM-resident.  Single-buffer them only when they are large enough to
    # matter for VMEM headroom (v7x); tiny weights keep the default pipeline.
    if single_buffer_weights is None:
        single_buffer_weights = weight_bytes > (8 << 20)

    def full(arr):
        kwargs = {"pipeline_mode": pl.Buffered(1)} if single_buffer_weights else {}
        return pl.BlockSpec(arr.shape, lambda i: (0,) * arr.ndim, **kwargs)

    in_specs = [
        pl.BlockSpec((tile_b, in_dim), lambda i: (i, 0)),    # x1 (batch-tiled, f32)
        pl.BlockSpec((tile_b, in_dim), lambda i: (i, 0)),    # x2 (batch-tiled, f32)
        full(params["we0"]), full(params["be0"]),            # embedding layer 0
        full(params["we1"]), full(params["be1"]),            # embedding layer 1
        pl.BlockSpec(memory_space=pltpu.MemorySpace.SMEM),   # PReLU alpha (scalar)
        full(params["wf1a"]), full(params["wf1b"]), full(params["bf1"]),  # fc1 split
        full(params["wf2p"]), full(params["bf2p"]),          # fc2 (lane-padded)
    ]
    out_specs = pl.BlockSpec((tile_b, PAD_CLASSES), lambda i: (i, 0))

    hidden = params["we0"].shape[1]
    emb = params["we1"].shape[1]
    flops = Bp * (4 * in_dim * hidden + 4 * hidden * emb
                  + 4 * emb * 256 + 2 * 256 * PAD_CLASSES)
    bytes_accessed = 2 * Bp * in_dim * 4 + Bp * PAD_CLASSES * 4 + weight_bytes
    cost = pl.CostEstimate(flops=int(flops),
                           transcendentals=int(Bp * (PAD_CLASSES + 1)),
                           bytes_accessed=int(bytes_accessed))

    padded = pl.pallas_call(
        siamese_kernel,
        out_shape=jax.ShapeDtypeStruct((Bp, PAD_CLASSES), jnp.float32),
        grid=(num_tiles,),
        in_specs=in_specs,
        out_specs=out_specs,
        compiler_params=pltpu.CompilerParams(
            dimension_semantics=("parallel",),
            vmem_limit_bytes=48 * 1024 * 1024),   # v5e scoped default is only 16 MiB
        cost_estimate=cost,
    )(x1f, x2f,
      params["we0"], params["be0"], params["we1"], params["be1"],
      params["alpha"],
      params["wf1a"], params["wf1b"], params["bf1"],
      params["wf2p"], params["bf2p"])

    return padded[:B, :NUM_CLASSES]


def make_params(key, in_dim, hidden, emb_dim):
    """Deterministic synthetic parameter init (shapes from the module __init__)."""
    ks = jax.random.split(key, 6)
    scale = 0.05
    we0 = scale * jax.random.normal(ks[0], (in_dim, hidden), jnp.float32)
    be0 = scale * jax.random.normal(ks[1], (1, hidden), jnp.float32)
    we1 = scale * jax.random.normal(ks[2], (hidden, emb_dim), jnp.float32)
    be1 = scale * jax.random.normal(ks[3], (1, emb_dim), jnp.float32)
    wf1 = scale * jax.random.normal(ks[4], (2 * emb_dim, 256), jnp.float32)
    bf1 = jnp.zeros((1, 256), jnp.float32)
    wf2 = scale * jax.random.normal(ks[5], (256, NUM_CLASSES), jnp.float32)
    bf2 = jnp.zeros((1, NUM_CLASSES), jnp.float32)

    # Lane-dense padding of the 3-class head to 128 output lanes.
    wf2p = jnp.zeros((256, PAD_CLASSES), jnp.float32).at[:, :NUM_CLASSES].set(wf2)
    bf2p = jnp.full((1, PAD_CLASSES), NEG_PAD, jnp.float32).at[:, :NUM_CLASSES].set(bf2)

    bf16 = jnp.bfloat16
    return {
        # Matmul operands stored once in bf16 (native MXU dtype); biases and the
        # PReLU slope stay f32 (added after the f32 accumulation).
        "we0": we0.astype(bf16), "be0": be0,
        "we1": we1.astype(bf16), "be1": be1,
        "alpha": jnp.full((1, 1), 0.25, jnp.float32),     # nn.PReLU default init
        "wf1a": wf1[:emb_dim].astype(bf16),
        "wf1b": wf1[emb_dim:].astype(bf16),
        "bf1": bf1,
        "wf2p": wf2p.astype(bf16), "bf2p": bf2p,
    }


def reference_forward(x1, x2, params):
    """Pure-JAX f32 reference (weights upcast from their stored dtype)."""
    B = x1.shape[0]
    x1f = x1.reshape(B, -1).astype(jnp.float32)
    x2f = x2.reshape(B, -1).astype(jnp.float32)
    we0 = params["we0"].astype(jnp.float32)
    we1 = params["we1"].astype(jnp.float32)
    wf1 = jnp.concatenate([params["wf1a"], params["wf1b"]], axis=0).astype(jnp.float32)
    wf2 = params["wf2p"].astype(jnp.float32)[:, :NUM_CLASSES]
    bf2 = params["bf2p"][:, :NUM_CLASSES]
    alpha = params["alpha"][0, 0]

    def emb(x):
        h = jnp.maximum(x @ we0 + params["be0"], 0.0)
        return h @ we1 + params["be1"]

    cat = jnp.concatenate([emb(x1f), emb(x2f)], axis=1)
    p = jnp.where(cat > 0, cat, alpha * cat)
    h1 = p @ wf1 + params["bf1"]
    logits = h1 @ wf2 + bf2
    return jax.nn.log_softmax(logits, axis=-1)


if __name__ == "__main__":
    B, C, H, W = 2, 4, 16, 16
    HIDDEN, EMB = 32, 32

    key = jax.random.PRNGKey(0)
    kx1, kx2, kp = jax.random.split(key, 3)
    x1 = jax.random.normal(kx1, (B, C, H, W), jnp.float32)
    x2 = jax.random.normal(kx2, (B, C, H, W), jnp.float32)
    params = make_params(kp, C * H * W, HIDDEN, EMB)

    scores = siamese_forward(x1, x2, params)
    jax.block_until_ready(scores)

    # sanity: shape, finiteness, probabilities sum to 1, and agreement with a
    # pure-JAX f32 reference (bf16 matmul operands -> loose tolerance).
    assert scores.shape == (B, NUM_CLASSES)
    assert bool(jnp.all(jnp.isfinite(scores)))
    assert bool(jnp.allclose(jnp.sum(jnp.exp(scores), axis=-1), 1.0, atol=1e-2))
    ref = reference_forward(x1, x2, params)
    assert bool(jnp.allclose(scores, ref, atol=5e-2, rtol=5e-2))
    print("KERNEL_OK")
</pallas_src>

<mosaic_0001>
module attributes {stable_mosaic.version = 11 : i64} {
  func.func @siamese_kernel(%arg0: i32, %arg1: memref<16x1024xf32, #tpu.memory_space<vmem>>, %arg2: memref<16x1024xf32, #tpu.memory_space<vmem>>, %arg3: memref<1024x32xbf16, #tpu.memory_space<vmem>>, %arg4: memref<1x32xf32, #tpu.memory_space<vmem>>, %arg5: memref<32x32xbf16, #tpu.memory_space<vmem>>, %arg6: memref<1x32xf32, #tpu.memory_space<vmem>>, %arg7: memref<1x1xf32, #tpu.memory_space<smem>>, %arg8: memref<32x256xbf16, #tpu.memory_space<vmem>>, %arg9: memref<32x256xbf16, #tpu.memory_space<vmem>>, %arg10: memref<1x256xf32, #tpu.memory_space<vmem>>, %arg11: memref<256x128xbf16, #tpu.memory_space<vmem>>, %arg12: memref<1x128xf32, #tpu.memory_space<vmem>>, %arg13: memref<16x128xf32, #tpu.memory_space<vmem>>) attributes {dimension_semantics = [#tpu.dimension_semantics<parallel>], iteration_bounds = array<i64: 1>, scalar_prefetch = 0 : i64, scratch_operands = 0 : i64, tpu.core_type = #tpu.core_type<tc>, window_params = [{transform_indices = @transform_0, window_bounds = array<i64: 16, 1024>}, {transform_indices = @transform_1, window_bounds = array<i64: 16, 1024>}, {pipeline_mode = #tpu.pipeline_mode<synchronous>, transform_indices = @transform_2, window_bounds = array<i64: 1024, 32>}, {pipeline_mode = #tpu.pipeline_mode<synchronous>, transform_indices = @transform_3, window_bounds = array<i64: 1, 32>}, {pipeline_mode = #tpu.pipeline_mode<synchronous>, transform_indices = @transform_4, window_bounds = array<i64: 32, 32>}, {pipeline_mode = #tpu.pipeline_mode<synchronous>, transform_indices = @transform_5, window_bounds = array<i64: 1, 32>}, {transform_indices = @transform_6, window_bounds = array<i64: 1, 1>}, {pipeline_mode = #tpu.pipeline_mode<synchronous>, transform_indices = @transform_7, window_bounds = array<i64: 32, 256>}, {pipeline_mode = #tpu.pipeline_mode<synchronous>, transform_indices = @transform_8, window_bounds = array<i64: 32, 256>}, {pipeline_mode = #tpu.pipeline_mode<synchronous>, transform_indices = @transform_9, window_bounds = array<i64: 1, 256>}, {pipeline_mode = #tpu.pipeline_mode<synchronous>, transform_indices = @transform_10, window_bounds = array<i64: 256, 128>}, {pipeline_mode = #tpu.pipeline_mode<synchronous>, transform_indices = @transform_11, window_bounds = array<i64: 1, 128>}, {transform_indices = @transform_12, window_bounds = array<i64: 16, 128>}]} {
    %c0 = arith.constant 0 : index
    %c0_0 = arith.constant 0 : index
    %0 = memref.load %arg7[%c0, %c0_0] : memref<1x1xf32, #tpu.memory_space<smem>>
    %c0_1 = arith.constant 0 : index
    %c0_2 = arith.constant 0 : index
    %1 = vector.load %arg1[%c0_1, %c0_2] : memref<16x1024xf32, #tpu.memory_space<vmem>>, vector<16x1024xf32>
    %2 = arith.truncf %1 : vector<16x1024xf32> to vector<16x1024xbf16>
    %c0_3 = arith.constant 0 : index
    %c0_4 = arith.constant 0 : index
    %3 = vector.load %arg3[%c0_3, %c0_4] : memref<1024x32xbf16, #tpu.memory_space<vmem>>, vector<1024x32xbf16>
    %cst = arith.constant dense<0.000000e+00> : vector<16x32xf32>
    %4 = tpu.matmul %2, %3, %cst {dimension_numbers = #tpu.dot_dimension_numbers<[1], [0], [0], [1], [0, 0, 1, 1], [], []>} : vector<16x1024xbf16>, vector<1024x32xbf16>, vector<16x32xf32> -> vector<16x32xf32>
    %c0_5 = arith.constant 0 : index
    %c0_6 = arith.constant 0 : index
    %5 = vector.load %arg4[%c0_5, %c0_6] : memref<1x32xf32, #tpu.memory_space<vmem>>, vector<1x32xf32>
    %6 = vector.broadcast %5 : vector<1x32xf32> to vector<16x32xf32>
    %7 = arith.addf %4, %6 : vector<16x32xf32>
    %cst_7 = arith.constant 0.000000e+00 : f32
    %8 = vector.broadcast %cst_7 : f32 to vector<16x32xf32>
    %9 = arith.maximumf %7, %8 : vector<16x32xf32>
    %10 = arith.truncf %9 : vector<16x32xf32> to vector<16x32xbf16>
    %c0_8 = arith.constant 0 : index
    %c0_9 = arith.constant 0 : index
    %11 = vector.load %arg5[%c0_8, %c0_9] : memref<32x32xbf16, #tpu.memory_space<vmem>>, vector<32x32xbf16>
    %cst_10 = arith.constant dense<0.000000e+00> : vector<16x32xf32>
    %12 = tpu.matmul %10, %11, %cst_10 {dimension_numbers = #tpu.dot_dimension_numbers<[1], [0], [0], [1], [0, 0, 1, 1], [], []>} : vector<16x32xbf16>, vector<32x32xbf16>, vector<16x32xf32> -> vector<16x32xf32>
    %c0_11 = arith.constant 0 : index
    %c0_12 = arith.constant 0 : index
    %13 = vector.load %arg6[%c0_11, %c0_12] : memref<1x32xf32, #tpu.memory_space<vmem>>, vector<1x32xf32>
    %14 = vector.broadcast %13 : vector<1x32xf32> to vector<16x32xf32>
    %15 = arith.addf %12, %14 : vector<16x32xf32>
    %cst_13 = arith.constant 0.000000e+00 : f32
    %16 = vector.broadcast %cst_13 : f32 to vector<16x32xf32>
    %17 = arith.cmpf ogt, %15, %16 : vector<16x32xf32>
    %18 = vector.broadcast %0 : f32 to vector<16x32xf32>
    %19 = arith.mulf %18, %15 : vector<16x32xf32>
    %20 = arith.select %17, %15, %19 : vector<16x32xi1>, vector<16x32xf32>
    %21 = arith.truncf %20 : vector<16x32xf32> to vector<16x32xbf16>
    %c0_14 = arith.constant 0 : index
    %c0_15 = arith.constant 0 : index
    %22 = vector.load %arg2[%c0_14, %c0_15] : memref<16x1024xf32, #tpu.memory_space<vmem>>, vector<16x1024xf32>
    %23 = arith.truncf %22 : vector<16x1024xf32> to vector<16x1024xbf16>
    %c0_16 = arith.constant 0 : index
    %c0_17 = arith.constant 0 : index
    %24 = vector.load %arg3[%c0_16, %c0_17] : memref<1024x32xbf16, #tpu.memory_space<vmem>>, vector<1024x32xbf16>
    %cst_18 = arith.constant dense<0.000000e+00> : vector<16x32xf32>
    %25 = tpu.matmul %23, %24, %cst_18 {dimension_numbers = #tpu.dot_dimension_numbers<[1], [0], [0], [1], [0, 0, 1, 1], [], []>} : vector<16x1024xbf16>, vector<1024x32xbf16>, vector<16x32xf32> -> vector<16x32xf32>
    %c0_19 = arith.constant 0 : index
    %c0_20 = arith.constant 0 : index
    %26 = vector.load %arg4[%c0_19, %c0_20] : memref<1x32xf32, #tpu.memory_space<vmem>>, vector<1x32xf32>
    %27 = vector.broadcast %26 : vector<1x32xf32> to vector<16x32xf32>
    %28 = arith.addf %25, %27 : vector<16x32xf32>
    %cst_21 = arith.constant 0.000000e+00 : f32
    %29 = vector.broadcast %cst_21 : f32 to vector<16x32xf32>
    %30 = arith.maximumf %28, %29 : vector<16x32xf32>
    %31 = arith.truncf %30 : vector<16x32xf32> to vector<16x32xbf16>
    %c0_22 = arith.constant 0 : index
    %c0_23 = arith.constant 0 : index
    %32 = vector.load %arg5[%c0_22, %c0_23] : memref<32x32xbf16, #tpu.memory_space<vmem>>, vector<32x32xbf16>
    %cst_24 = arith.constant dense<0.000000e+00> : vector<16x32xf32>
    %33 = tpu.matmul %31, %32, %cst_24 {dimension_numbers = #tpu.dot_dimension_numbers<[1], [0], [0], [1], [0, 0, 1, 1], [], []>} : vector<16x32xbf16>, vector<32x32xbf16>, vector<16x32xf32> -> vector<16x32xf32>
    %c0_25 = arith.constant 0 : index
    %c0_26 = arith.constant 0 : index
    %34 = vector.load %arg6[%c0_25, %c0_26] : memref<1x32xf32, #tpu.memory_space<vmem>>, vector<1x32xf32>
    %35 = vector.broadcast %34 : vector<1x32xf32> to vector<16x32xf32>
    %36 = arith.addf %33, %35 : vector<16x32xf32>
    %cst_27 = arith.constant 0.000000e+00 : f32
    %37 = vector.broadcast %cst_27 : f32 to vector<16x32xf32>
    %38 = arith.cmpf ogt, %36, %37 : vector<16x32xf32>
    %39 = vector.broadcast %0 : f32 to vector<16x32xf32>
    %40 = arith.mulf %39, %36 : vector<16x32xf32>
    %41 = arith.select %38, %36, %40 : vector<16x32xi1>, vector<16x32xf32>
    %42 = arith.truncf %41 : vector<16x32xf32> to vector<16x32xbf16>
    %c0_28 = arith.constant 0 : index
    %c0_29 = arith.constant 0 : index
    %43 = vector.load %arg8[%c0_28, %c0_29] : memref<32x256xbf16, #tpu.memory_space<vmem>>, vector<32x256xbf16>
    %cst_30 = arith.constant dense<0.000000e+00> : vector<16x256xf32>
    %44 = tpu.matmul %21, %43, %cst_30 {dimension_numbers = #tpu.dot_dimension_numbers<[1], [0], [0], [1], [0, 0, 1, 1], [], []>} : vector<16x32xbf16>, vector<32x256xbf16>, vector<16x256xf32> -> vector<16x256xf32>
    %c0_31 = arith.constant 0 : index
    %c0_32 = arith.constant 0 : index
    %45 = vector.load %arg9[%c0_31, %c0_32] : memref<32x256xbf16, #tpu.memory_space<vmem>>, vector<32x256xbf16>
    %cst_33 = arith.constant dense<0.000000e+00> : vector<16x256xf32>
    %46 = tpu.matmul %42, %45, %cst_33 {dimension_numbers = #tpu.dot_dimension_numbers<[1], [0], [0], [1], [0, 0, 1, 1], [], []>} : vector<16x32xbf16>, vector<32x256xbf16>, vector<16x256xf32> -> vector<16x256xf32>
    %47 = arith.addf %44, %46 : vector<16x256xf32>
    %c0_34 = arith.constant 0 : index
    %c0_35 = arith.constant 0 : index
    %48 = vector.load %arg10[%c0_34, %c0_35] : memref<1x256xf32, #tpu.memory_space<vmem>>, vector<1x256xf32>
    %49 = vector.broadcast %48 : vector<1x256xf32> to vector<16x256xf32>
    %50 = arith.addf %47, %49 : vector<16x256xf32>
    %51 = arith.truncf %50 : vector<16x256xf32> to vector<16x256xbf16>
    %c0_36 = arith.constant 0 : index
    %c0_37 = arith.constant 0 : index
    %52 = vector.load %arg11[%c0_36, %c0_37] : memref<256x128xbf16, #tpu.memory_space<vmem>>, vector<256x128xbf16>
    %cst_38 = arith.constant dense<0.000000e+00> : vector<16x128xf32>
    %53 = tpu.matmul %51, %52, %cst_38 {dimension_numbers = #tpu.dot_dimension_numbers<[1], [0], [0], [1], [0, 0, 1, 1], [], []>} : vector<16x256xbf16>, vector<256x128xbf16>, vector<16x128xf32> -> vector<16x128xf32>
    %c0_39 = arith.constant 0 : index
    %c0_40 = arith.constant 0 : index
    %54 = vector.load %arg12[%c0_39, %c0_40] : memref<1x128xf32, #tpu.memory_space<vmem>>, vector<1x128xf32>
    %55 = vector.broadcast %54 : vector<1x128xf32> to vector<16x128xf32>
    %56 = arith.addf %53, %55 : vector<16x128xf32>
    %cst_41 = arith.constant dense<0xFF800000> : vector<16xf32>
    %57 = vector.multi_reduction <maximumf>, %56, %cst_41 [1] : vector<16x128xf32> to vector<16xf32>
    %58 = vector.shape_cast %57 : vector<16xf32> to vector<16x1xf32>
    %59 = vector.broadcast %58 : vector<16x1xf32> to vector<16x128xf32>
    %60 = arith.subf %56, %59 : vector<16x128xf32>
    %61 = math.exp %60 : vector<16x128xf32>
    %cst_42 = arith.constant dense<0.000000e+00> : vector<16xf32>
    %62 = vector.multi_reduction <add>, %61, %cst_42 [1] : vector<16x128xf32> to vector<16xf32>
    %63 = vector.shape_cast %62 : vector<16xf32> to vector<16x1xf32>
    %64 = math.log %63 : vector<16x1xf32>
    %65 = vector.broadcast %64 : vector<16x1xf32> to vector<16x128xf32>
    %66 = arith.subf %60, %65 : vector<16x128xf32>
    %c0_43 = arith.constant 0 : index
    %c0_44 = arith.constant 0 : index
    %67 = vector.load %arg13[%c0_43, %c0_44] : memref<16x128xf32, #tpu.memory_space<vmem>>, vector<16x128xf32>
    tpu.vector_store %arg13[%c0_43, %c0_44], %66 {strides = array<i32>} : memref<16x128xf32, #tpu.memory_space<vmem>>, vector<16x128xf32>,
    return
  }
  func.func @transform_0(%arg0: i32) -> (i32, i32) {
    %c0_i32 = arith.constant 0 : i32
    %c0_i32_0 = arith.constant 0 : i32
    return %arg0, %c0_i32 : i32, i32
  }
  func.func @transform_1(%arg0: i32) -> (i32, i32) {
    %c0_i32 = arith.constant 0 : i32
    %c0_i32_0 = arith.constant 0 : i32
    return %arg0, %c0_i32 : i32, i32
  }
  func.func @transform_2(%arg0: i32) -> (i32, i32) {
    %c0_i32 = arith.constant 0 : i32
    %c0_i32_0 = arith.constant 0 : i32
    %c0_i32_1 = arith.constant 0 : i32
    return %c0_i32, %c0_i32_0 : i32, i32
  }
  func.func @transform_3(%arg0: i32) -> (i32, i32) {
    %c0_i32 = arith.constant 0 : i32
    %c0_i32_0 = arith.constant 0 : i32
    %c0_i32_1 = arith.constant 0 : i32
    return %c0_i32, %c0_i32_0 : i32, i32
  }
  func.func @transform_4(%arg0: i32) -> (i32, i32) {
    %c0_i32 = arith.constant 0 : i32
    %c0_i32_0 = arith.constant 0 : i32
    %c0_i32_1 = arith.constant 0 : i32
    return %c0_i32, %c0_i32_0 : i32, i32
  }
  func.func @transform_5(%arg0: i32) -> (i32, i32) {
    %c0_i32 = arith.constant 0 : i32
    %c0_i32_0 = arith.constant 0 : i32
    %c0_i32_1 = arith.constant 0 : i32
    return %c0_i32, %c0_i32_0 : i32, i32
  }
  func.func @transform_6(%arg0: i32) -> (i32, i32) {
    %c0_i32 = arith.constant 0 : i32
    %c0_i32_0 = arith.constant 0 : i32
    %c0_i32_1 = arith.constant 0 : i32
    return %c0_i32, %c0_i32_0 : i32, i32
  }
  func.func @transform_7(%arg0: i32) -> (i32, i32) {
    %c0_i32 = arith.constant 0 : i32
    %c0_i32_0 = arith.constant 0 : i32
    %c0_i32_1 = arith.constant 0 : i32
    return %c0_i32, %c0_i32_0 : i32, i32
  }
  func.func @transform_8(%arg0: i32) -> (i32, i32) {
    %c0_i32 = arith.constant 0 : i32
    %c0_i32_0 = arith.constant 0 : i32
    %c0_i32_1 = arith.constant 0 : i32
    return %c0_i32, %c0_i32_0 : i32, i32
  }
  func.func @transform_9(%arg0: i32) -> (i32, i32) {
    %c0_i32 = arith.constant 0 : i32
    %c0_i32_0 = arith.constant 0 : i32
    %c0_i32_1 = arith.constant 0 : i32
    return %c0_i32, %c0_i32_0 : i32, i32
  }
  func.func @transform_10(%arg0: i32) -> (i32, i32) {
    %c0_i32 = arith.constant 0 : i32
    %c0_i32_0 = arith.constant 0 : i32
    %c0_i32_1 = arith.constant 0 : i32
    return %c0_i32, %c0_i32_0 : i32, i32
  }
  func.func @transform_11(%arg0: i32) -> (i32, i32) {
    %c0_i32 = arith.constant 0 : i32
    %c0_i32_0 = arith.constant 0 : i32
    %c0_i32_1 = arith.constant 0 : i32
    return %c0_i32, %c0_i32_0 : i32, i32
  }
  func.func @transform_12(%arg0: i32) -> (i32, i32) {
    %c0_i32 = arith.constant 0 : i32
    %c0_i32_0 = arith.constant 0 : i32
    return %arg0, %c0_i32 : i32, i32
  }
}

</mosaic_0001>

<bundles_post_ra>
// kernel: tpu_custom_call.1
= control target key start
LH: loop header
LB: loop body
LE: loop exit
PB: predicated region body
PF: predicated region fallthrough
CT: control target
= control target key end

     0   :  { %s2650_s0 = inlined_call_operand.vmem [shape: f32[16,1024], index: 0, kind: input, shape index: {}]   ;;  %s2651_s1 = inlined_call_operand.vmem [shape: f32[16,1024], index: 1, kind: input, shape index: {}]   ;;  %s2652_s2 = inlined_call_operand.vmem [shape: bf16[1024,32], index: 2, kind: input, shape index: {}]   ;;  %s2653_s3 = inlined_call_operand.vmem [shape: f32[1,32], index: 3, kind: input, shape index: {}]   ;;  %s2654_s4 = inlined_call_operand.vmem [shape: bf16[32,32], index: 4, kind: input, shape index: {}]   ;;  %s2655_s5 = inlined_call_operand.vmem [shape: f32[1,32], index: 5, kind: input, shape index: {}]   ;;  %s2656_s6 = inlined_call_operand.<no memory space> [shape: f32[1,1], index: 6, kind: input, shape index: {}]   ;;  %s2657_s7 = inlined_call_operand.vmem [shape: bf16[32,256], index: 7, kind: input, shape index: {}]   ;;  %s2658_s8 = inlined_call_operand.vmem [shape: bf16[32,256], index: 8, kind: input, shape index: {}]   ;;  %s2659_s9 = inlined_call_operand.vmem [shape: f32[1,256], index: 9, kind: input, shape index: {}]   ;;  %s2660_s10 = inlined_call_operand.vmem [shape: bf16[256,128], index: 10, kind: input, shape index: {}]   ;;  %s2661_s11 = inlined_call_operand.vmem [shape: f32[1,128], index: 11, kind: input, shape index: {}]   ;;  %s2662_s12 = inlined_call_operand.hbm [shape: f32[16,128], index: 12, kind: output, shape index: {}]  }
   0x1   :  { %v1966_v0 = vld [vmem:[%s2652_s2 + $0x78] sm:$0xff]   ;;  %v1989_v4 = vld [vmem:[%s2652_s2 + $0x70] sm:$0xff]   ;;  %v2013_v8 = vld [vmem:[%s2652_s2 + $0x68] sm:$0xff]  }
   0x2   :  { %v1971_v1 = vld [vmem:[%s2652_s2 + $0xf8] sm:$0xff]   ;;  %1542 = vmatprep.subr.bf16.mxu0 %v1966_v0  ;;  %v1995_v5 = vld [vmem:[%s2652_s2 + $0xf0] sm:$0xff]   ;;  %v2019_v9 = vld [vmem:[%s2652_s2 + $0xe8] sm:$0xff]  }
   0x3   :  { %v1977_v2 = vld [vmem:[%s2652_s2 + $0x38] sm:$0xff]   ;;  %1564 = vmatprep.subr.bf16.mxu1 %v1971_v1  ;;  %v2001_v6 = vld [vmem:[%s2652_s2 + $0x30] sm:$0xff]   ;;  %v2025_v10 = vld [vmem:[%s2652_s2 + $0x28] sm:$0xff]  }
   0x4   :  { %v1983_v3 = vld [vmem:[%s2652_s2 + $0xb8] sm:$0xff]   ;;  %1543 = vmatpush3.bf16.msra.mxu0 %v1977_v2  ;;  %v2007_v7 = vld [vmem:[%s2652_s2 + $0xb0] sm:$0xff]   ;;  %v2031_v11 = vld [vmem:[%s2652_s2 + $0xa8] sm:$0xff]  }
   0x5   :  { %1565 = vmatpush3.bf16.msra.mxu1 %v1983_v3  ;;  %1544 = vmatprep.subr.bf16.mxu0 %v1989_v4  ;;  %v2037_v12 = vld [vmem:[%s2652_s2 + $0x60] sm:$0xff]   ;;  %v2061_v16 = vld [vmem:[%s2652_s2 + $0x58] sm:$0xff]   ;;  %v2085_v20 = vld [vmem:[%s2652_s2 + $0x50] sm:$0xff]  }
   0x6   :  { %1566 = vmatprep.subr.bf16.mxu1 %v1995_v5  ;;  %v2043_v13 = vld [vmem:[%s2652_s2 + $0xe0] sm:$0xff]   ;;  %v2067_v17 = vld [vmem:[%s2652_s2 + $0xd8] sm:$0xff]   ;;  %v2091_v21 = vld [vmem:[%s2652_s2 + $0xd0] sm:$0xff]  }
   0x7   :  { %v2049_v14 = vld [vmem:[%s2652_s2 + $0x20] sm:$0xff]   ;;  %v2073_v18 = vld [vmem:[%s2652_s2 + $0x18] sm:$0xff]   ;;  %v2097_v22 = vld [vmem:[%s2652_s2 + $0x10] sm:$0xff]  }
   0x8   :  { %1545 = vmatpush3.bf16.msra.mxu0 %v2001_v6  ;;  %v2055_v15 = vld [vmem:[%s2652_s2 + $0xa0] sm:$0xff]   ;;  %v2079_v19 = vld [vmem:[%s2652_s2 + $0x98] sm:$0xff]   ;;  %v2103_v23 = vld [vmem:[%s2652_s2 + $0x90] sm:$0xff]  }
   0x9   :  { %1567 = vmatpush3.bf16.msra.mxu1 %v2007_v7  ;;  %1546 = vmatprep.subr.bf16.mxu0 %v2013_v8  ;;  %v2109_v24 = vld [vmem:[%s2652_s2 + $0x48] sm:$0xff]   ;;  %v2133_v28 = vld [vmem:[%s2652_s2 + $0x40] sm:$0xff]   ;;  %v48_v34 = vld [vmem:[%s2650_s0 + $0x18] sm:$0xff] }
   0xa   :  { %1568 = vmatprep.subr.bf16.mxu1 %v2019_v9  ;;  %v2115_v25 = vld [vmem:[%s2652_s2 + $0xc8] sm:$0xff]   ;;  %v2139_v29 = vld [vmem:[%s2652_s2 + $0xc0] sm:$0xff]   ;;  %v56_v36 = vld [vmem:[%s2650_s0 + $0x58] sm:$0xff] }
   0xb   :  { %v2121_v26 = vld [vmem:[%s2652_s2 + $0x8] sm:$0xff]   ;;  %v2145_v30 = vld [vmem:[%s2652_s2] sm:$0xff]   ;;  %v64_v39 = vpack.c.bf16 %v56_v36, %v48_v34  ;;  %v47_v41 = vld [vmem:[%s2650_s0 + $0x10] sm:$0xff] }
   0xc   :  { %1547 = vmatpush3.bf16.msra.mxu0 %v2025_v10  ;;  %v2127_v27 = vld [vmem:[%s2652_s2 + $0x88] sm:$0xff]   ;;  %v2151_v31 = vld [vmem:[%s2652_s2 + $0x80] sm:$0xff]   ;;  %v55_v42 = vld [vmem:[%s2650_s0 + $0x50] sm:$0xff] }
   0xd   :  { %1569 = vmatpush3.bf16.msra.mxu1 %v2031_v11  ;;  %1548 = vmatprep.subr.bf16.mxu0 %v2037_v12  ;;  %v46_v32 = vld [vmem:[%s2650_s0 + $0x8] sm:$0xff]  ;;  %v45_v37 = vld [vmem:[%s2650_s0] sm:$0xff]  ;;  %v63_v43 = vpack.c.bf16 %v55_v42, %v47_v41  ;;  %v2182_v44 = vld [vmem:[%s2652_s2 + $0x178] sm:$0xff]  }
   0xe   :  { %1570 = vmatprep.subr.bf16.mxu1 %v2043_v13  ;;  %v54_v33 = vld [vmem:[%s2650_s0 + $0x48] sm:$0xff]  ;;  %v53_v38 = vld [vmem:[%s2650_s0 + $0x40] sm:$0xff]  ;;  %661 = vmatprep.mubr.bf16.mxu1 %v64_v39  ;;  %v2187_v45 = vld [vmem:[%s2652_s2 + $0x1f8] sm:$0xff]  }
   0xf   :  { %v62_v35 = vpack.c.bf16 %v54_v33, %v46_v32  ;;  %v61_v40 = vpack.c.bf16 %v53_v38, %v45_v37  ;;  %v2193_v46 = vld [vmem:[%s2652_s2 + $0x138] sm:$0xff]   ;;  %v2205_v48 = vld [vmem:[%s2652_s2 + $0x170] sm:$0xff]   ;;  %v2229_v52 = vld [vmem:[%s2652_s2 + $0x168] sm:$0xff]  }
  0x10   :  { %1549 = vmatpush3.bf16.msra.mxu0 %v2049_v14  ;;  %v2199_v47 = vld [vmem:[%s2652_s2 + $0x1b8] sm:$0xff]   ;;  %v2211_v49 = vld [vmem:[%s2652_s2 + $0x1f0] sm:$0xff]   ;;  %v2235_v53 = vld [vmem:[%s2652_s2 + $0x1e8] sm:$0xff]  }
  0x11   :  { %1571 = vmatpush3.bf16.msra.mxu1 %v2055_v15  ;;  %1550 = vmatprep.subr.bf16.mxu0 %v2061_v16  ;;  %v2217_v50 = vld [vmem:[%s2652_s2 + $0x130] sm:$0xff]   ;;  %v2241_v54 = vld [vmem:[%s2652_s2 + $0x128] sm:$0xff]   ;;  %v2253_v56 = vld [vmem:[%s2652_s2 + $0x160] sm:$0xff]  }
  0x12   :  { %1572 = vmatprep.subr.bf16.mxu1 %v2067_v17  ;;  %620 = vmatprep.mubr.bf16.mxu0 %v62_v35  ;;  %v2223_v51 = vld [vmem:[%s2652_s2 + $0x1b0] sm:$0xff]   ;;  %v2247_v55 = vld [vmem:[%s2652_s2 + $0x1a8] sm:$0xff]   ;;  %2673 = vst [vmem:[#allocation6_spill] sm:$0xff] %v2253_v56  ;;  %v2259_v57 = vld [vmem:[%s2652_s2 + $0x1e0] sm:$0xff]  }
  0x13   :  { %v2265_v58 = vld [vmem:[%s2652_s2 + $0x120] sm:$0xff]   ;;  %v2277_v60 = vld [vmem:[%s2652_s2 + $0x158] sm:$0xff]   ;;  %v2301_v32 = vld [vmem:[%s2652_s2 + $0x150] sm:$0xff]  }
  0x14   :  { %1551 = vmatpush3.bf16.msra.mxu0 %v2073_v18  ;;  %2674 = vst [vmem:[#allocation7_spill] sm:$0xff] %v2265_v58  ;;  %v2271_v59 = vld [vmem:[%s2652_s2 + $0x1a0] sm:$0xff]   ;;  %2675 = vst [vmem:[#allocation8_spill] sm:$0xff] %v2277_v60  ;;  %v2283_v61 = vld [vmem:[%s2652_s2 + $0x1d8] sm:$0xff]  }
  0x15   :  { %1573 = vmatpush3.bf16.msra.mxu1 %v2079_v19  ;;  %1552 = vmatprep.subr.bf16.mxu0 %v2085_v20  ;;  %v2289_v62 = vld [vmem:[%s2652_s2 + $0x118] sm:$0xff]   ;;  %2677 = vst [vmem:[#allocation10_spill] sm:$0xff] %v2301_v32  ;;  %v2307_v33 = vld [vmem:[%s2652_s2 + $0x1d0] sm:$0xff]   ;;  %v2325_v36 = vld [vmem:[%s2652_s2 + $0x148] sm:$0xff]  }
  0x16   :  { %1574 = vmatprep.subr.bf16.mxu1 %v2091_v21  ;;  %2676 = vst [vmem:[#allocation9_spill] sm:$0xff] %v2289_v62  ;;  %v2295_v63 = vld [vmem:[%s2652_s2 + $0x198] sm:$0xff]   ;;  %v2313_v34 = vld [vmem:[%s2652_s2 + $0x110] sm:$0xff]   ;;  %2679 = vst [vmem:[#allocation12_spill] sm:$0xff] %v2325_v36 }
  0x17   :  { %2678 = vst [vmem:[#allocation11_spill] sm:$0xff] %v2313_v34  ;;  %v2319_v35 = vld [vmem:[%s2652_s2 + $0x190] sm:$0xff]   ;;  %v2331_v37 = vld [vmem:[%s2652_s2 + $0x1c8] sm:$0xff]   ;;  %v2355_v41 = vld [vmem:[%s2652_s2 + $0x1c0] sm:$0xff]  }
  0x18   :  { %1553 = vmatpush3.bf16.msra.mxu0 %v2097_v22  ;;  %v2337_v38 = vld [vmem:[%s2652_s2 + $0x108] sm:$0xff]   ;;  %v2361_v42 = vld [vmem:[%s2652_s2 + $0x100] sm:$0xff]  }
  0x19   :  { %1575 = vmatpush3.bf16.msra.mxu1 %v2103_v23  ;;  %1554 = vmatprep.subr.bf16.mxu0 %v2109_v24  ;;  %2680 = vst [vmem:[#allocation13_spill] sm:$0xff] %v2337_v38  ;;  %v2343_v39 = vld [vmem:[%s2652_s2 + $0x188] sm:$0xff]   ;;  %2682 = vst [vmem:[#allocation15_spill] sm:$0xff] %v2361_v42 }
  0x1a   :  { %1576 = vmatprep.subr.bf16.mxu1 %v2115_v25 }
  0x1c   :  { %1555 = vmatpush3.bf16.msra.mxu0 %v2121_v26 }
  0x1d   :  { %1577 = vmatpush3.bf16.msra.mxu1 %v2127_v27  ;;  %1556 = vmatprep.subr.bf16.mxu0 %v2133_v28 }
  0x1e   :  { %1578 = vmatprep.subr.bf16.mxu1 %v2139_v29 }
  0x20   :  { %1557 = vmatpush3.bf16.msra.mxu0 %v2145_v30 }
  0x21   :  { %1579 = vmatpush3.bf16.msra.mxu1 %v2151_v31  ;;  %1586 = vmatprep.subr.bf16.mxu0 %v2182_v44 }
  0x22   :  { %1608 = vmatprep.subr.bf16.mxu1 %v2187_v45 }
  0x23   :  { %621 = vmatmul.mubr.bf16.vlgmr.msra.gmra.mxu0 %v61_v40  ;;  %v2349_v40 = vld [vmem:[%s2652_s2 + $0x140] sm:$0xff]  }
  0x24   :  { %662 = vmatmul.mubr.bf16.vlgmr.msra.gmra.mxu1 %v63_v43  ;;  %1587 = vmatpush3.bf16.msra.mxu0 %v2193_v46  ;;  %2681 = vst [vmem:[#allocation14_spill] sm:$0xff] %v2349_v40  ;;  %v2367_v43 = vld [vmem:[%s2652_s2 + $0x180] sm:$0xff]  }
  0x25   :  { %1609 = vmatpush3.bf16.msra.mxu1 %v2199_v47  ;;  %1588 = vmatprep.subr.bf16.mxu0 %v2205_v48 }
  0x26   :  { %1610 = vmatprep.subr.bf16.mxu1 %v2211_v49 }
  0x28   :  { %1589 = vmatpush3.bf16.msra.mxu0 %v2217_v50 }
  0x29   :  { %1611 = vmatpush3.bf16.msra.mxu1 %v2223_v51  ;;  %1590 = vmatprep.subr.bf16.mxu0 %v2229_v52 }
  0x2a   :  { %1612 = vmatprep.subr.bf16.mxu1 %v2235_v53 }
  0x2c   :  { %1591 = vmatpush3.bf16.msra.mxu0 %v2241_v54 }
  0x2d   :  { %1613 = vmatpush3.bf16.msra.mxu1 %v2247_v55  ;;  %1592 = vmatprep.subr.bf16.mxu0 %v2253_v56 }
  0x2e   :  { %1614 = vmatprep.subr.bf16.mxu1 %v2259_v57 }
  0x30   :  { %1593 = vmatpush3.bf16.msra.mxu0 %v2265_v58  ;;  %v51_v58 = vld [vmem:[%s2650_s0 + $0x30] sm:$0xff] }
  0x31   :  { %1615 = vmatpush3.bf16.msra.mxu1 %v2271_v59  ;;  %1594 = vmatprep.subr.bf16.mxu0 %v2277_v60  ;;  %v57_v60 = vld [vmem:[%s2650_s0 + $0x60] sm:$0xff] }
  0x32   :  { %1616 = vmatprep.subr.bf16.mxu1 %v2283_v61 }
  0x34   :  { %1595 = vmatpush3.bf16.msra.mxu0 %v2289_v62 }
  0x35   :  { %1617 = vmatpush3.bf16.msra.mxu1 %v2295_v63  ;;  %1596 = vmatprep.subr.bf16.mxu0 %v2301_v32 }
  0x36   :  { %1618 = vmatprep.subr.bf16.mxu1 %v2307_v33 }
  0x38   :  { %1597 = vmatpush3.bf16.msra.mxu0 %v2313_v34  ;;  %v60_v34 = vld [vmem:[%s2650_s0 + $0x78] sm:$0xff] }
  0x39   :  { %1619 = vmatpush3.bf16.msra.mxu1 %v2319_v35  ;;  %1598 = vmatprep.subr.bf16.mxu0 %v2325_v36  ;;  %v52_v36 = vld [vmem:[%s2650_s0 + $0x38] sm:$0xff] }
  0x3a   :  { %1620 = vmatprep.subr.bf16.mxu1 %v2331_v37  ;;  %v68_v62 = vpack.c.bf16 %v60_v34, %v52_v36 }
  0x3c   :  { %1599 = vmatpush3.bf16.msra.mxu0 %v2337_v38  ;;  %v50_v38 = vld [vmem:[%s2650_s0 + $0x28] sm:$0xff]  ;;  %743 = vmatprep.mubr.bf16.mxu1 %v68_v62 }
  0x3d   :  { %1621 = vmatpush3.bf16.msra.mxu1 %v2343_v39  ;;  %1600 = vmatprep.subr.bf16.mxu0 %v2349_v40  ;;  %v58_v40 = vld [vmem:[%s2650_s0 + $0x68] sm:$0xff] }
  0x3e   :  { %1622 = vmatprep.subr.bf16.mxu1 %v2355_v41  ;;  %v66_v32 = vpack.c.bf16 %v58_v40, %v50_v38  ;;  %v59_v38 = vld [vmem:[%s2650_s0 + $0x70] sm:$0xff] }
  0x3f   :  { %v67_v34 = vpack.c.bf16 %v59_v38, %v51_v58 }
  0x40   :  { %1601 = vmatpush3.bf16.msra.mxu0 %v2361_v42  ;;  %v49_v42 = vld [vmem:[%s2650_s0 + $0x20] sm:$0xff]  ;;  %702 = vmatprep.mubr.bf16.mxu0 %v66_v32 }
  0x41   :  { %1623 = vmatpush3.bf16.msra.mxu1 %v2367_v43  ;;  %1655 = vmatprep.subr.bf16.mxu0 %v1971_v1  ;;  %v65_v56 = vpack.c.bf16 %v57_v60, %v49_v42 }
  0x43   :  { %703 = vmatmul.mubr.bf16.vlgmr.msra.gmra.mxu0 %v65_v56 }
  0x44   :  { %744 = vmatmul.mubr.bf16.vlgmr.msra.gmra.mxu1 %v67_v34  ;;  %1656 = vmatpush3.bf16.msra.mxu0 %v1983_v3 }
  0x45   :  { %1657 = vmatprep.subr.bf16.mxu0 %v1995_v5 }
  0x48   :  { %1658 = vmatpush3.bf16.msra.mxu0 %v2007_v7 }
  0x49   :  { %1659 = vmatprep.subr.bf16.mxu0 %v2019_v9 }
  0x4c   :  { %1660 = vmatpush3.bf16.msra.mxu0 %v2031_v11 }
  0x4d   :  { %1661 = vmatprep.subr.bf16.mxu0 %v2043_v13 }
  0x50   :  { %1662 = vmatpush3.bf16.msra.mxu0 %v2055_v15 }
  0x51   :  { %18 = vsyncpa [#allocation4], 0  ;;  %1663 = vmatprep.subr.bf16.mxu0 %v2067_v17  ;;  %v2415_v1 = vld [vmem:[%s2654_s4 + $0x8] sm:$0xff]   ;;  %v1892_v3 = vmov 0.0   ;;  %v2423_v5 = vld [vmem:[%s2654_s4] sm:$0xff]   ;;  %vm1893_vm0 = vmmov 0  }
  0x52   :  { %1746 = vmatprep.subr.bf16.mxu1 %v1892_v3  ;;  %1750 = vmatprep.mubr.msk.bf16.mxu1 %vm1893_vm0, %v1892_v3  ;;  %v834_v7 = vld [vmem:[%s2651_s1 + $0x18] sm:$0xff]  ;;  %v833_v13 = vld [vmem:[%s2651_s1 + $0x10] sm:$0xff]  ;;  %vm778_vm1 = vcmask 261120  }
  0x53   :  { %1747 = vmatpush3.bf16.msra.mxu1 %v2415_v1  ;;  %v842_v9 = vld [vmem:[%s2651_s1 + $0x58] sm:$0xff] }
  0x54   :  { %1664 = vmatpush3.bf16.msra.mxu0 %v2079_v19  ;;  %1748 = vmatprep.subr.bf16.mxu1 %v1892_v3  ;;  %v850_v11 = vpack.c.bf16 %v842_v9, %v834_v7  ;;  %v838_v17 = vld [vmem:[%s2651_s1 + $0x38] sm:$0xff] }
  0x55   :  { %1665 = vmatprep.subr.bf16.mxu0 %v2091_v21  ;;  %v846_v19 = vld [vmem:[%s2651_s1 + $0x78] sm:$0xff] }
  0x56   :  { %928 = vmatprep.mubr.bf16.mxu0 %v850_v11  ;;  %v854_v21 = vpack.c.bf16 %v846_v19, %v838_v17  ;;  %v840_v17 = vld [vmem:[%s2651_s1 + $0x48] sm:$0xff] }
  0x57   :  { %1749 = vmatpush3.bf16.msra.mxu1 %v2423_v5 }
  0x58   :  { %1666 = vmatpush3.bf16.msra.mxu0 %v2103_v23  ;;  %1633 = vmatprep.subr.bf16.mxu1 %v1966_v0  ;;  %v841_v0 = vld [vmem:[%s2651_s1 + $0x50] sm:$0xff] }
  0x59   :  { %1667 = vmatprep.subr.bf16.mxu0 %v2115_v25  ;;  %v849_v15 = vpack.c.bf16 %v841_v0, %v833_v13  ;;  %v837_v23 = vld [vmem:[%s2651_s1 + $0x30] sm:$0xff] }
  0x5a   :  { %v845_v25 = vld [vmem:[%s2651_s1 + $0x70] sm:$0xff] }
  0x5c   :  { %1668 = vmatpush3.bf16.msra.mxu0 %v2127_v27  ;;  %v853_v27 = vpack.c.bf16 %v845_v25, %v837_v23 }
  0x5d   :  { %1669 = vmatprep.subr.bf16.mxu0 %v2139_v29 }
  0x60   :  { %1670 = vmatpush3.bf16.msra.mxu0 %v2151_v31 }
  0x61   :  { %1699 = vmatprep.subr.bf16.mxu0 %v2187_v45 }
  0x63   :  { %929 = vmatmul.mubr.bf16.vlgmr.msra.gmra.mxu0 %v849_v15  ;;  %v832_v15 = vld [vmem:[%s2651_s1 + $0x8] sm:$0xff] }
  0x64   :  { %1700 = vmatpush3.bf16.msra.mxu0 %v2199_v47  ;;  %1010 = vmatprep.mubr.bf16.mxu0 %v854_v21  ;;  %v848_v23 = vpack.c.bf16 %v840_v17, %v832_v15 }
  0x65   :  { %1701 = vmatprep.subr.bf16.mxu0 %v2211_v49 }
  0x68   :  { %1702 = vmatpush3.bf16.msra.mxu0 %v2223_v51 }
  0x69   :  { %1703 = vmatprep.subr.bf16.mxu0 %v2235_v53 }
  0x6c   :  { %1704 = vmatpush3.bf16.msra.mxu0 %v2247_v55  ;;  %v2471_v55 = vld [vmem:[%s2653_s3] ss:$0 sm:$0xff] }
  0x6d   :  { %1705 = vmatprep.subr.bf16.mxu0 %v2259_v57 }
  0x70   :  { %1706 = vmatpush3.bf16.msra.mxu0 %v2271_v59 }
  0x71   :  { %1707 = vmatprep.subr.bf16.mxu0 %v2283_v61 }
  0x74   :  { %1708 = vmatpush3.bf16.msra.mxu0 %v2295_v63 }
  0x75   :  { %1709 = vmatprep.subr.bf16.mxu0 %v2307_v33 }
  0x78   :  { %1710 = vmatpush3.bf16.msra.mxu0 %v2319_v35 }
  0x79   :  { %1711 = vmatprep.subr.bf16.mxu0 %v2331_v37 }
  0x7c   :  { %1712 = vmatpush3.bf16.msra.mxu0 %v2343_v39 }
  0x7d   :  { %1713 = vmatprep.subr.bf16.mxu0 %v2355_v41 }
  0x80   :  { %1714 = vmatpush3.bf16.msra.mxu0 %v2367_v43 }
  0x83   :  { %1011 = vmatmul.mubr.bf16.vlgmr.msra.gmra.mxu0 %v853_v27 }
  0xe3   :  { %v1558_v29 = vpop.f32.mrf.mxu0 }
  0xe4   :  { %v1580_v31 = vpop.f32.mrf.mxu1 }
  0xe5   :  { %v1559_v45 = vpop.f32.mrf.mxu0 }
  0xe6   :  { %v1581_v47 = vpop.f32.mrf.mxu1  ;;  %v1560_v51 = vadd.f32 %v1559_v45, %v1558_v29  ;;  %v2546_v29 = vstv %s2656_s6 }
  0xe7   :  { %v1561_v49 = vpop.f32.mrf.mxu0  ;;  %v1582_v58 = vadd.f32 %v1581_v47, %v1580_v31 }
  0xe8   :  { %v1583_v53 = vpop.f32.mrf.mxu1  ;;  %v623_v57 = vadd.f32 %v1560_v51, %v2471_v55 }
  0xe9   :  { %v1562_v56 = vpop.f32.mrf.mxu0 }
  0xea   :  { %v1563_v59 = vadd.f32 %v1562_v56, %v1561_v49  ;;  %v1584_v60 = vpop.f32.mrf.mxu1  ;;  %v664_v32 = vadd.f32 %v1582_v58, %v623_v57 }
  0xeb   :  { %v1585_v39 = vadd.f32 %v1584_v60, %v1583_v53 }
  0xec   :  { %v626_v33 = vadd.f32 %v1563_v59, %v2471_v55 }
  0xee   :  { %v667_v43 = vadd.f32 %v1585_v39, %v626_v33 }
 0x103   :  { %v1602_v61 = vpop.f32.mrf.mxu0 }
 0x104   :  { %v1624_v62 = vpop.f32.mrf.mxu1 }
 0x105   :  { %v1603_v63 = vpop.f32.mrf.mxu0 }
 0x106   :  { %v1604_v35 = vadd.f32 %v1603_v63, %v1602_v61  ;;  %v1625_v36 = vpop.f32.mrf.mxu1 }
 0x107   :  { %v1605_v37 = vpop.f32.mrf.mxu0  ;;  %v1626_v38 = vadd.f32 %v1625_v36, %v1624_v62 }
 0x108   :  { %v705_v40 = vadd.f32 %v1604_v35, %v664_v32  ;;  %v1627_v41 = vpop.f32.mrf.mxu1 }
 0x109   :  { %v1606_v42 = vpop.f32.mrf.mxu0 }
 0x10a   :  { %v1607_v34 = vadd.f32 %v1606_v42, %v1605_v37  ;;  %v1628_v7 = vpop.f32.mrf.mxu1  ;;  %v746_v9 = vadd.f32 %v1626_v38, %v705_v40 }
 0x10b   :  { %v1629_v13 = vadd.f32 %v1628_v7, %v1627_v41 }
 0x10c   :  { %v708_v11 = vadd.f32 %v1607_v34, %v667_v43  ;;  %v752_v19 = vmax.f32 %v746_v9, 0.0 }
 0x10e   :  { %v749_v0 = vadd.f32 %v1629_v13, %v708_v11 }
 0x110   :  { %v753_v21 = vmax.f32 %v749_v0, 0.0 }
 0x112   :  { %v754_v25 = vpack.c.bf16 %v753_v21, %v752_v19 }
 0x114   :  { %1751 = vmatmul.mubr.msk.bf16.vlgmr.msra.gmra.mxu1 %vm778_vm1, %v754_v25 }
 0x115   :  { %1634 = vmatpush3.bf16.msra.mxu1 %v1977_v2  ;;  %887 = vmatprep.mubr.bf16.mxu1 %v848_v23  ;;  %v831_v2 = vld [vmem:[%s2651_s1] sm:$0xff] }
 0x116   :  { %1635 = vmatprep.subr.bf16.mxu1 %v1989_v4  ;;  %v839_v4 = vld [vmem:[%s2651_s1 + $0x40] sm:$0xff] }
 0x119   :  { %1636 = vmatpush3.bf16.msra.mxu1 %v2001_v6  ;;  %v836_v6 = vld [vmem:[%s2651_s1 + $0x28] sm:$0xff] }
 0x11a   :  { %1637 = vmatprep.subr.bf16.mxu1 %v2013_v8  ;;  %v844_v8 = vld [vmem:[%s2651_s1 + $0x68] sm:$0xff] }
 0x11d   :  { %1638 = vmatpush3.bf16.msra.mxu1 %v2025_v10  ;;  %v847_v10 = vpack.c.bf16 %v839_v4, %v831_v2 }
 0x11e   :  { %1639 = vmatprep.subr.bf16.mxu1 %v2037_v12  ;;  %v852_v12 = vpack.c.bf16 %v844_v8, %v836_v6 }
 0x121   :  { %1640 = vmatpush3.bf16.msra.mxu1 %v2049_v14  ;;  %v2683_v14 = vld [vmem:[#allocation6_spill] sm:$0xff] }
 0x122   :  { %1641 = vmatprep.subr.bf16.mxu1 %v2061_v16  ;;  %v2684_v16 = vld [vmem:[#allocation7_spill] sm:$0xff] }
 0x123   :  { %v1671_v56 = vpop.f32.mrf.mxu0 }
 0x125   :  { %1642 = vmatpush3.bf16.msra.mxu1 %v2073_v18  ;;  %v2685_v18 = vld [vmem:[#allocation8_spill] sm:$0xff]  ;;  %v1672_v57 = vpop.f32.mrf.mxu0 }
 0x126   :  { %1643 = vmatprep.subr.bf16.mxu1 %v2085_v20  ;;  %v2686_v20 = vld [vmem:[#allocation9_spill] sm:$0xff]  ;;  %v1673_v36 = vadd.f32 %v1672_v57, %v1671_v56  ;;  %v1853_v57 = vld [vmem:[%s2660_s10 + $0x20] sm:$0xff]  }
 0x127   :  { %v1674_v59 = vpop.f32.mrf.mxu0  ;;  %v1845_v56 = vld [vmem:[%s2657_s7 + $0x4] ss:$8 sps:$4 sm:$0xff]  }
 0x129   :  { %1644 = vmatpush3.bf16.msra.mxu1 %v2097_v22  ;;  %v2687_v22 = vld [vmem:[#allocation10_spill] sm:$0xff]  ;;  %v1675_v61 = vpop.f32.mrf.mxu0 }
 0x12a   :  { %1645 = vmatprep.subr.bf16.mxu1 %v2109_v24  ;;  %v2688_v24 = vld [vmem:[#allocation11_spill] sm:$0xff]  ;;  %v1676_v9 = vadd.f32 %v1675_v61, %v1674_v59  ;;  %v1858_v59 = vld [vmem:[%s2660_s10 + $0x48] sm:$0xff]   ;;  %v1860_v61 = vld [vmem:[%s2660_s10 + $0x40] sm:$0xff]  }
 0x12d   :  { %1646 = vmatpush3.bf16.msra.mxu1 %v2121_v26  ;;  %v2689_v26 = vld [vmem:[#allocation12_spill] sm:$0xff] }
 0x12e   :  { %1647 = vmatprep.subr.bf16.mxu1 %v2133_v28  ;;  %v2690_v28 = vld [vmem:[#allocation13_spill] sm:$0xff] }
 0x131   :  { %1648 = vmatpush3.bf16.msra.mxu1 %v2145_v30  ;;  %v835_v30 = vld [vmem:[%s2651_s1 + $0x20] sm:$0xff] }
 0x132   :  { %1677 = vmatprep.subr.bf16.mxu1 %v2182_v44  ;;  %v843_v44 = vld [vmem:[%s2651_s1 + $0x60] sm:$0xff] }
 0x134   :  { %888 = vmatmul.mubr.bf16.vlgmr.msra.gmra.mxu1 %v847_v10  ;;  %v1834_v10 = vld [vmem:[%s2658_s8 + $0x10] ss:$8 sps:$4 sm:$0xff]  }
 0x135   :  { %1678 = vmatpush3.bf16.msra.mxu1 %v2193_v46  ;;  %969 = vmatprep.mubr.bf16.mxu1 %v852_v12  ;;  %v2691_v46 = vld [vmem:[#allocation14_spill] sm:$0xff]  ;;  %v1839_v12 = vld [vmem:[%s2658_s8 + $0x4] ss:$8 sps:$4 sm:$0xff]  }
 0x136   :  { %1679 = vmatprep.subr.bf16.mxu1 %v2205_v48  ;;  %v851_v48 = vpack.c.bf16 %v843_v44, %v835_v30  ;;  %v1851_v30 = vld [vmem:[%s2660_s10 + $0x28] sm:$0xff]  }
 0x139   :  { %1680 = vmatpush3.bf16.msra.mxu1 %v2217_v50  ;;  %v2692_v50 = vld [vmem:[#allocation15_spill] sm:$0xff] }
 0x13a   :  { %1681 = vmatprep.subr.bf16.mxu1 %v2229_v52  ;;  %v2540_v52 = vld [vmem:[%s2655_s5] ss:$0 sm:$0xff] }
 0x13d   :  { %1682 = vmatpush3.bf16.msra.mxu1 %v2241_v54 }
 0x13e   :  { %1683 = vmatprep.subr.bf16.mxu1 %v2683_v14  ;;  %v1837_v14 = vld [vmem:[%s2658_s8] ss:$8 sps:$4 sm:$0xff]  }
 0x141   :  { %1684 = vmatpush3.bf16.msra.mxu1 %v2684_v16  ;;  %v1842_v16 = vld [vmem:[%s2657_s7 + $0x14] ss:$8 sps:$4 sm:$0xff]  }
 0x142   :  { %1685 = vmatprep.subr.bf16.mxu1 %v2685_v18  ;;  %v1894_v18 = vmov 0  }
 0x143   :  { %v1715_v63 = vpop.f32.mrf.mxu0 }
 0x145   :  { %1686 = vmatpush3.bf16.msra.mxu1 %v2686_v20  ;;  %v1716_v35 = vpop.f32.mrf.mxu0  ;;  %v1846_v20 = vld [vmem:[%s2660_s10 + $0x78] sm:$0xff]  }
 0x146   :  { %1687 = vmatprep.subr.bf16.mxu1 %v2687_v22  ;;  %v1717_v15 = vadd.f32 %v1716_v35, %v1715_v63  ;;  %v1847_v22 = vld [vmem:[%s2660_s10 + $0x38] sm:$0xff]   ;;  %1724 = vmatprep.subr.bf16.mxu0 %v1846_v20 }
 0x147   :  { %v1718_v41 = vpop.f32.mrf.mxu0  ;;  %1725 = vmatpush3.bf16.msra.mxu0 %v1847_v22 }
 0x149   :  { %1688 = vmatpush3.bf16.msra.mxu1 %v2688_v24  ;;  %v1719_v13 = vpop.f32.mrf.mxu0  ;;  %v1848_v24 = vld [vmem:[%s2660_s10 + $0x70] sm:$0xff]  }
 0x14a   :  { %1689 = vmatprep.subr.bf16.mxu1 %v2689_v26  ;;  %v1720_v23 = vadd.f32 %v1719_v13, %v1718_v41  ;;  %v1849_v26 = vld [vmem:[%s2660_s10 + $0x30] sm:$0xff]   ;;  %1726 = vmatprep.subr.bf16.mxu0 %v1848_v24 }
 0x14b   :  { %1727 = vmatpush3.bf16.msra.mxu0 %v1849_v26 }
 0x14d   :  { %1690 = vmatpush3.bf16.msra.mxu1 %v2690_v28  ;;  %v1850_v28 = vld [vmem:[%s2660_s10 + $0x68] sm:$0xff]  }
 0x14e   :  { %1691 = vmatprep.subr.bf16.mxu1 %v2691_v46  ;;  %1728 = vmatprep.subr.bf16.mxu0 %v1850_v28 }
 0x14f   :  { %1729 = vmatpush3.bf16.msra.mxu0 %v1851_v30 }
 0x151   :  { %1692 = vmatpush3.bf16.msra.mxu1 %v2692_v50 }
 0x152   :  { %1754 = vmatprep.subr.bf16.mxu1 %v1892_v3 }
 0x154   :  { %970 = vmatmul.mubr.bf16.vlgmr.msra.gmra.mxu1 %v851_v48 }
 0x155   :  { %1755 = vmatpush3.bf16.msra.mxu1 %v2415_v1  ;;  %1758 = vmatprep.mubr.msk.bf16.mxu1 %vm1893_vm0, %v1892_v3 }
 0x156   :  { %1756 = vmatprep.subr.bf16.mxu1 %v1892_v3 }
 0x159   :  { %1757 = vmatpush3.bf16.msra.mxu1 %v2423_v5 }
 0x1d4   :  { %v816_v54 = vpop.f32.mrf.mxu1 }
 0x1d5   :  { %v817_v27 = vadd.f32 %v2540_v52, %v816_v54 }
 0x1d6   :  { %v1752_v1 = vpop.f32.mrf.mxu1 }
 0x1d7   :  { %v826_v45 = vmul.f32 %v2546_v29, %v817_v27  ;;  %vm823_vm2 = vcmp.gt.f32.partialorder %v817_v27, 0.0 }
 0x1d8   :  { %v819_v31 = vpop.f32.mrf.mxu1 }
 0x1d9   :  { %v820_v3 = vadd.f32 %v2540_v52, %v819_v31  ;;  %v2551_v49 = vsel %vm823_vm2, %v817_v27, %v826_v45 }
 0x1da   :  { %v1753_v5 = vpop.f32.mrf.mxu1 }
 0x1db   :  { %vm824_vm3 = vcmp.gt.f32.partialorder %v820_v3, 0.0  ;;  %v827_v47 = vmul.f32 %v2546_v29, %v820_v3  ;;  %v1840_v5 = vld [vmem:[%s2657_s7 + $0x10] ss:$8 sps:$4 sm:$0xff]  }
 0x1dd   :  { %v2553_v51 = vsel %vm824_vm3, %v820_v3, %v827_v47 }
 0x1de   :  { %v830_v53 = vpack.c.bf16 %v2553_v51, %v2551_v49  ;;  %v1855_v49 = vld [vmem:[%s2660_s10 + $0x18] sm:$0xff]   ;;  %v1856_v51 = vld [vmem:[%s2660_s10 + $0x50] sm:$0xff]  }
 0x1f4   :  { %v1649_v58 = vpop.f32.mrf.mxu1 }
 0x1f6   :  { %v1650_v60 = vpop.f32.mrf.mxu1 }
 0x1f7   :  { %v1651_v32 = vadd.f32 %v1650_v60, %v1649_v58  ;;  %v1854_v58 = vld [vmem:[%s2660_s10 + $0x58] sm:$0xff]   ;;  %v1859_v60 = vld [vmem:[%s2660_s10 + $0x8] sm:$0xff]  }
 0x1f8   :  { %v1652_v62 = vpop.f32.mrf.mxu1 }
 0x1f9   :  { %v890_v37 = vadd.f32 %v1651_v32, %v2471_v55 }
 0x1fa   :  { %v1653_v33 = vpop.f32.mrf.mxu1 }
 0x1fb   :  { %v1654_v39 = vadd.f32 %v1653_v33, %v1652_v62  ;;  %v931_v38 = vadd.f32 %v1673_v36, %v890_v37  ;;  %v1861_v62 = vld [vmem:[%s2660_s10] sm:$0xff]   ;;  %v1215_v33 = vlaneseq }
 0x1fd   :  { %v893_v43 = vadd.f32 %v1654_v39, %v2471_v55  ;;  %v1836_v55 = vld [vmem:[%s2658_s8 + $0x14] ss:$8 sps:$4 sm:$0xff]   ;;  %v1216_v37 = vshrl.u32 %v1215_v33, 7 }
 0x1fe   :  { %1116 = vmatprep.subr.bf16.mxu1 %v1836_v55 }
 0x1ff   :  { %v934_v17 = vadd.f32 %v1676_v9, %v893_v43  ;;  %v1217_v41 = vsub.s32 0, %v1216_v37  ;;  %v1213_v43 = vld [vmem:[%s2659_s9] sm:$0x3] }
 0x201   :  { %v1218_v13 = vrot.slane %v1213_v43, %v1217_v41 }
 0x214   :  { %v1693_v40 = vpop.f32.mrf.mxu1 }
 0x216   :  { %v1694_v42 = vpop.f32.mrf.mxu1 }
 0x217   :  { %v1695_v34 = vadd.f32 %v1694_v42, %v1693_v40  ;;  %v1221_v40 = vsub.s32 1, %v1216_v37 }
 0x218   :  { %v1696_v7 = vpop.f32.mrf.mxu1 }
 0x219   :  { %v972_v11 = vadd.f32 %v1695_v34, %v931_v38 }
 0x21a   :  { %v1697_v0 = vpop.f32.mrf.mxu1 }
 0x21b   :  { %v1698_v19 = vadd.f32 %v1697_v0, %v1696_v7  ;;  %v1013_v21 = vadd.f32 %v1717_v15, %v972_v11  ;;  %v1222_v7 = vrot.slane %v1213_v43, %v1221_v40 }
 0x21d   :  { %v975_v25 = vadd.f32 %v1698_v19, %v934_v17  ;;  %v1019_v4 = vmax.f32 %v1013_v21, 0.0 }
 0x21f   :  { %v1016_v2 = vadd.f32 %v1720_v23, %v975_v25 }
 0x221   :  { %v1020_v6 = vmax.f32 %v1016_v2, 0.0 }
 0x223   :  { %v1021_v8 = vpack.c.bf16 %v1020_v6, %v1019_v4 }
 0x225   :  { %1759 = vmatmul.mubr.msk.bf16.vlgmr.msra.gmra.mxu1 %vm778_vm1, %v1021_v8  ;;  %v1525_v8 = vld [vmem:[%s2661_s11] ss:$0 sm:$0xff]  ;;  %s1895_s11 = smov [#allocation3]  }
 0x226   :  { %1117 = vmatpush1.bf16.msra.mxu1 %v1834_v10  ;;  %1136 = vmatprep.mubr.bf16.mxu1 %v1894_v18  ;;  %s1434_s14 = sshll.u32 %s1895_s11, 4  ;;  %s1435_s14 = int_to_ptr.vmem [resolvable:$true] %s1434_s14 }
 0x227   :  { %1118 = vmatprep.subr.bf16.mxu1 %v1839_v12  ;;  %s1870_s1 = scalar_lea.vmem %s1435_s14, 256  ;;  %p1875_p1 = scmp.lt.s32.totalorder %s1435_s14, %s1435_s14 }
 0x228   :  { %p1871_p0 = scmp.ne.s32.totalorder %s1435_s14, %s1870_s1  ;;  %p1876_p2 = scmp.lt.s32.totalorder %s1870_s1, %s1870_s1 }
 0x22a   :  { %1119 = vmatpush1.bf16.msra.mxu1 %v1837_v14  ;;  %p1877_p3 = por %p1876_p2, %p1875_p1 }
 0x22b   :  { %1182 = vmatprep.subr.bf16.mxu1 %v1842_v16 }
 0x22c   :  { %p1878_p4 = pnand %p1877_p3, %p1871_p0 }
 0x2e5   :  { %v1059_v44 = vpop.f32.mrf.mxu1 }
 0x2e6   :  { %v1060_v46 = vadd.f32 %v2540_v52, %v1059_v44 }
 0x2e7   :  { %v1760_v48 = vpop.f32.mrf.mxu1 }
 0x2e8   :  { %v1068_v54 = vmul.f32 %v1060_v46, %v2546_v29  ;;  %vm1066_vm4 = vcmp.gt.f32.partialorder %v1060_v46, 0.0 }
 0x2e9   :  { %v1062_v50 = vpop.f32.mrf.mxu1 }
 0x2ea   :  { %v1063_v27 = vadd.f32 %v2540_v52, %v1062_v50  ;;  %v1070_v45 = vsel %vm1066_vm4, %v1060_v46, %v1068_v54  ;;  %v1843_v52 = vld [vmem:[%s2657_s7] ss:$8 sps:$4 sm:$0xff]  }
 0x2eb   :  { %v1761_v1 = vpop.f32.mrf.mxu1 }
 0x2ec   :  { %vm1067_vm5 = vcmp.gt.f32.partialorder %v1063_v27, 0.0  ;;  %v1069_v31 = vmul.f32 %v1063_v27, %v2546_v29  ;;  %v1852_v29 = vld [vmem:[%s2660_s10 + $0x60] sm:$0xff]  }
 0x2ed   :  { %1730 = vmatprep.subr.bf16.mxu0 %v1852_v29 }
 0x2ee   :  { %v1071_v3 = vsel %vm1067_vm5, %v1063_v27, %v1069_v31  ;;  %1731 = vmatpush3.bf16.msra.mxu0 %v1853_v57 }
 0x2ef   :  { %v1072_v47 = vpack.c.bf16 %v1071_v3, %v1070_v45  ;;  %1732 = vmatprep.subr.bf16.mxu0 %v1854_v58 }
 0x2f1   :  { %1519 = vmatmul.mubr.msk.bf16.vlgmr.msra.gmra.mxu1 %vm778_vm1, %v1072_v47 }
 0x2f2   :  { %1183 = vmatpush1.bf16.msra.mxu1 %v1840_v5  ;;  %1202 = vmatprep.mubr.bf16.mxu1 %v1894_v18 }
 0x2f3   :  { %1184 = vmatprep.subr.bf16.mxu1 %v1845_v56  ;;  %1733 = vmatpush3.bf16.msra.mxu0 %v1855_v49 }
 0x2f4   :  { %1734 = vmatprep.subr.bf16.mxu0 %v1856_v51 }
 0x2f6   :  { %1185 = vmatpush1.bf16.msra.mxu1 %v1843_v52 }
 0x2f9   :  { %1524 = vmatmul.mubr.msk.bf16.vlgmr.msra.gmra.mxu1 %vm778_vm1, %v830_v53  ;;  %v1857_v53 = vld [vmem:[%s2660_s10 + $0x10] sm:$0xff]  }
 0x2fa   :  { %1735 = vmatpush3.bf16.msra.mxu0 %v1857_v53 }
 0x2fb   :  { %1736 = vmatprep.subr.bf16.mxu0 %v1858_v59 }
 0x2fe   :  { %1737 = vmatpush3.bf16.msra.mxu0 %v1859_v60 }
 0x2ff   :  { %1738 = vmatprep.subr.bf16.mxu0 %v1860_v61 }
 0x302   :  { %1739 = vmatpush3.bf16.msra.mxu0 %v1861_v62 }
 0x3b1   :  { %v1138_v63 = vpop.f32.mrf.mxu1 }
 0x3b3   :  { %v1140_v32 = vpop.f32.mrf.mxu1 }
 0x3b5   :  { %v1142_v35 = vpop.f32.mrf.mxu1 }
 0x3b7   :  { %v1144_v36 = vpop.f32.mrf.mxu1 }
 0x3b9   :  { %v1204_v39 = vpop.f32.mrf.mxu1 }
 0x3ba   :  { %v1205_v11 = vadd.f32 %v1204_v39, %v1138_v63 }
 0x3bb   :  { %v1206_v42 = vpop.f32.mrf.mxu1 }
 0x3bc   :  { %v1207_v34 = vadd.f32 %v1206_v42, %v1140_v32  ;;  %v1225_v23 = vadd.f32 %v1218_v13, %v1205_v11 }
 0x3bd   :  { %v1208_v38 = vpop.f32.mrf.mxu1 }
 0x3be   :  { %v1209_v9 = vadd.f32 %v1208_v38, %v1142_v35  ;;  %v1226_v19 = vadd.f32 %v1222_v7, %v1207_v34 }
 0x3bf   :  { %v1210_v0 = vpop.f32.mrf.mxu1 }
 0x3c0   :  { %v1211_v15 = vadd.f32 %v1210_v0, %v1144_v36  ;;  %v1227_v17 = vadd.f32 %v1218_v13, %v1209_v9 }
 0x3c2   :  { %v1228_v21 = vadd.f32 %v1222_v7, %v1211_v15  ;;  %v1229_v2 = vpack.c.bf16 %v1227_v17, %v1225_v23 }
 0x3c4   :  { %v1230_v25 = vpack.c.bf16 %v1228_v21, %v1226_v19 }
 0x3c6   :  { %1398 = vmatprep.mubr.bf16.mxu0 %v1230_v25 }
 0x3c7   :  { %1399 = vmatmul.mubr.bf16.vlgmr.msra.gmra.mxu0 %v1229_v2 }
 0x487   :  { %v1740_v4 = vpop.f32.mrf.mxu0 }
 0x489   :  { %v1741_v6 = vpop.f32.mrf.mxu0 }
 0x48a   :  { %v1742_v55 = vadd.f32 %v1741_v6, %v1740_v4 }
 0x48b   :  { %v1743_v10 = vpop.f32.mrf.mxu0 }
 0x48c   :  { %v1401_v12 = vadd.f32 %v1742_v55, %v1525_v8 }
 0x48d   :  { %v1744_v14 = vpop.f32.mrf.mxu0 }
 0x48e   :  { %v1745_v16 = vadd.f32 %v1744_v14, %v1743_v10  ;;  %1407 = vmax.xlane.f32.xlu0 %v1401_v12 }
 0x490   :  { %v1404_v18 = vadd.f32 %v1745_v16, %v1525_v8 }
 0x492   :  { %1409 = vmax.xlane.f32.xlu0 %v1404_v18 }
 0x517   :  { %v1408_v20 = vpop.xlane.xlu0 %1407 }
 0x518   :  { %v1411_v22 = vsub.f32 %v1401_v12, %v1408_v20 }
 0x51a   :  { %v1413_v24 = vmul.f32 1.442695, %v1411_v22 }
 0x51b   :  { %v1410_v26 = vpop.xlane.xlu0 %1409 }
 0x51c   :  { %v1412_v28 = vsub.f32 %v1404_v18, %v1410_v26  ;;  %1862 = vpow2.f32 %v1413_v24 }
 0x51e   :  { %v1415_v30 = vmul.f32 1.442695, %v1412_v28 }
 0x520   :  { %1864 = vpow2.f32 %v1415_v30 }
 0x529   :  { %v1863_v44 = vpop.eup %1862 }
 0x52a   :  { %1417 = vadd.xlane.f32.xlu1 %v1863_v44 }
 0x52d   :  { %v1865_v46 = vpop.eup %1864 }
 0x52e   :  { %1419 = vadd.xlane.f32.xlu1 %v1865_v46 }
 0x5b3   :  { %v1418_v48 = vpop.xlane.xlu1 %1417 }
 0x5b4   :  { %1866 = vlog2.f32 %v1418_v48 }
 0x5b7   :  { %v1420_v50 = vpop.xlane.xlu1 %1419 }
 0x5b8   :  { %1868 = vlog2.f32 %v1420_v50 }
 0x5c1   :  { %v1867_v54 = vpop.eup %1866 }
 0x5c2   :  { %v1422_v27 = vmul.f32 0.6931472, %v1867_v54 }
 0x5c4   :  { %v1425_v1 = vsub.f32 %v1411_v22, %v1422_v27 }
 0x5c5   :  { %v1869_v31 = vpop.eup %1868 }
 0x5c6   :  { %1427 = vst [vmem:[#allocation3] sm:$0xff] %v1425_v1  ;;  %v1424_v45 = vmul.f32 0.6931472, %v1869_v31 }
 0x5c8   :  { %v1426_v3 = vsub.f32 %v1412_v28, %v1424_v45 }
 0x5ca   :  { %1428 = vst [vmem:[#allocation3 + $0x8] sm:$0xff] %v1426_v3 }
 0x5cb   :  { %1881 = shalt.err (!%p1878_p4)
}
 0x5cc   :  { %s1896_s15 = smov 128   ;;  %s1897_s5 = smov 8  }
 0x5cd   :  { %1440 = dma.vmem_to_hbm [thread:$0]  %s1435_s14, 256, %s2662_s12, [#allocation4], %s1896_s15, %s1896_s15, %s1897_s5  }
 0x5ce   :  { %1890 = dma.done.wait [#allocation4], 256  }
 0x5cf   :  { %1891 = vsyncadd [#allocation4], 4294967040 }
 0x5d0   :  { %1444 = vsyncpa [#allocation4], 1 }

</bundles_post_ra>
